<compile_context>
chip_gen: v6e
topology: v6e:2x2x1
jax: 0.10.0
libtpu: 0.0.40
codegen_flags: <defaults>
</compile_context>

<pallas_src>
import numpy as np
import jax
import jax.numpy as jnp
from jax.experimental import pallas as pl
from jax.experimental.pallas import tpu as pltpu

# ---- small shapes consistent with SELayer usage on expanded conv channels ----
B = 2
C = 64                   # channels
RED = 4                  # reduction (SELayer default)
CR = C // RED            # 16
H = W = 16
HW = H * W               # 256 -> lane-dense last dim (2 x 128)


# ------------------------------------------------------------------
# Kernel: one grid step == one batch element.
#   x_ref / o_ref : (C, HW) float32   (batch dim squeezed away by the BlockSpec)
#   w1 : (C, CR) = fc1.weight.T     b1 : (CR, 1)
#   w2 : (CR, C) = fc2.weight.T     b2 : (C, 1)
# ------------------------------------------------------------------
def se_kernel(x_ref, w1_ref, b1_ref, w2_ref, b2_ref, o_ref):
    inv_hw = 1.0 / x_ref.shape[-1]           # static at trace time

    xb = x_ref[...]                                               # (C, HW)

    # global average pool over the spatial lanes
    pooled = jnp.sum(xb, axis=-1, keepdims=True) * inv_hw         # (C, 1)

    # z = relu(fc1.weight @ pooled + b1)  -- transposed-LHS matvec, stays a column
    z = jax.lax.dot_general(w1_ref[...], pooled, (((0,), (0,)), ((), ())),
                            preferred_element_type=jnp.float32) + b1_ref[...]   # (CR, 1)
    z = jnp.maximum(z, 0.0)

    # g = fc2.weight @ z + b2             -- gate produced directly as a (C, 1) column
    g = jax.lax.dot_general(w2_ref[...], z, (((0,), (0,)), ((), ())),
                            preferred_element_type=jnp.float32) + b2_ref[...]   # (C, 1)

    # h_sigmoid: relu6(g + 3) * (1/6)  (constant multiply, no divide)
    g = jnp.clip(g + 3.0, 0.0, 6.0) * (1.0 / 6.0)

    # scale: broadcast the per-channel gate over the HW lanes
    o_ref[...] = xb * g


# ------------------------------------------------------------------
# wrapper
# ------------------------------------------------------------------
def se_forward(x, p):
    b, c, h, w = x.shape
    hw = h * w
    x3 = x.reshape(b, c, hw)      # contiguous view: spatial flattened onto the lane axis

    w1, b1, w2, b2 = p["w1"], p["b1"], p["w2"], p["b2"]

    out = pl.pallas_call(
        se_kernel,
        out_shape=jax.ShapeDtypeStruct((b, c, hw), x.dtype),
        grid_spec=pltpu.PrefetchScalarGridSpec(
            num_scalar_prefetch=0,
            grid=(b,),
            in_specs=[
                pl.BlockSpec((None, c, hw), lambda i: (i, 0, 0)),   # x: one batch / step
                pl.BlockSpec(w1.shape, lambda i: (0, 0)),           # weights stay resident
                pl.BlockSpec(b1.shape, lambda i: (0, 0)),
                pl.BlockSpec(w2.shape, lambda i: (0, 0)),
                pl.BlockSpec(b2.shape, lambda i: (0, 0)),
            ],
            out_specs=pl.BlockSpec((None, c, hw), lambda i: (i, 0, 0)),
        ),
        compiler_params=pltpu.CompilerParams(
            dimension_semantics=("parallel",)),    # megacore-shard the batch axis (v7x)
        input_output_aliases={0: 0},               # overwrite x3's buffer with the output
    )(x3, w1, b1, w2, b2)
    return out.reshape(b, c, h, w)


se_forward_jit = jax.jit(se_forward)


# ------------------------------------------------------------------
# deterministic parameter init (shapes match nn.Linear weights, stored transposed)
# ------------------------------------------------------------------
def init_params(key):
    k1, k2, k3, k4 = jax.random.split(key, 4)
    return {
        "w1": 0.1 * jax.random.normal(k1, (C, CR), jnp.float32),   # fc1.weight.T
        "b1": 0.1 * jax.random.normal(k2, (CR, 1), jnp.float32),   # fc1.bias (column)
        "w2": 0.1 * jax.random.normal(k3, (CR, C), jnp.float32),   # fc2.weight.T
        "b2": 0.1 * jax.random.normal(k4, (C, 1), jnp.float32),    # fc2.bias (column)
    }


# ------------------------------------------------------------------
# plain-JAX reference (mirrors the PyTorch forward)
# ------------------------------------------------------------------
def reference(x, p):
    y = x.mean(axis=(2, 3))                                   # AdaptiveAvgPool2d(1) + view
    z = jnp.maximum(y @ p["w1"] + p["b1"][:, 0], 0.0)         # Linear -> ReLU
    g = z @ p["w2"] + p["b2"][:, 0]                           # Linear
    g = jnp.clip(g + 3.0, 0.0, 6.0) / 6.0                     # h_sigmoid = relu6(x+3)/6
    return x * g[:, :, None, None]                            # x * y.view(b, c, 1, 1)


if __name__ == "__main__":
    key = jax.random.PRNGKey(0)
    kp, kx = jax.random.split(key)
    params = init_params(kp)
    x = jax.random.normal(kx, (B, C, H, W), dtype=jnp.float32)

    ref = reference(x, params)          # reference first (kernel donates only its own reshaped copy)

    y = se_forward_jit(x, params)
    y = jax.block_until_ready(y)

    np.testing.assert_allclose(np.asarray(y), np.asarray(ref), rtol=2e-3, atol=2e-3)
    print("KERNEL_OK")
</pallas_src>

<mosaic_0001>
module attributes {stable_mosaic.version = 11 : i64} {
  func.func @se_kernel(%arg0: i32, %arg1: memref<1x64x256xf32, #tpu.memory_space<vmem>>, %arg2: memref<64x16xf32, #tpu.memory_space<vmem>>, %arg3: memref<16x1xf32, #tpu.memory_space<vmem>>, %arg4: memref<16x64xf32, #tpu.memory_space<vmem>>, %arg5: memref<64x1xf32, #tpu.memory_space<vmem>>, %arg6: memref<1x64x256xf32, #tpu.memory_space<vmem>>) attributes {dimension_semantics = [#tpu.dimension_semantics<parallel>], iteration_bounds = array<i64: 2>, scalar_prefetch = 0 : i64, scratch_operands = 0 : i64, tpu.core_type = #tpu.core_type<tc>, window_params = [{transform_indices = @transform_0, window_bounds = array<i64: 1, 64, 256>}, {pipeline_mode = #tpu.pipeline_mode<synchronous>, transform_indices = @transform_1, window_bounds = array<i64: 64, 16>}, {pipeline_mode = #tpu.pipeline_mode<synchronous>, transform_indices = @transform_2, window_bounds = array<i64: 16, 1>}, {pipeline_mode = #tpu.pipeline_mode<synchronous>, transform_indices = @transform_3, window_bounds = array<i64: 16, 64>}, {pipeline_mode = #tpu.pipeline_mode<synchronous>, transform_indices = @transform_4, window_bounds = array<i64: 64, 1>}, {transform_indices = @transform_5, window_bounds = array<i64: 1, 64, 256>}]} {
    %c0 = arith.constant 0 : index
    %c0_0 = arith.constant 0 : index
    %c0_1 = arith.constant 0 : index
    %0 = vector.load %arg1[%c0, %c0_0, %c0_1] : memref<1x64x256xf32, #tpu.memory_space<vmem>>, vector<1x64x256xf32>
    %1 = vector.shape_cast %0 : vector<1x64x256xf32> to vector<64x256xf32>
    %cst = arith.constant dense<0.000000e+00> : vector<64xf32>
    %2 = vector.multi_reduction <add>, %1, %cst [1] : vector<64x256xf32> to vector<64xf32>
    %3 = vector.shape_cast %2 : vector<64xf32> to vector<64x1xf32>
    %cst_2 = arith.constant 3.906250e-03 : f32
    %4 = vector.broadcast %cst_2 : f32 to vector<64x1xf32>
    %5 = arith.mulf %3, %4 : vector<64x1xf32>
    %c0_3 = arith.constant 0 : index
    %c0_4 = arith.constant 0 : index
    %6 = vector.load %arg2[%c0_3, %c0_4] : memref<64x16xf32, #tpu.memory_space<vmem>>, vector<64x16xf32>
    %cst_5 = arith.constant dense<0.000000e+00> : vector<16x1xf32>
    %7 = tpu.matmul %6, %5, %cst_5 {dimension_numbers = #tpu.dot_dimension_numbers<[0], [0], [1], [1], [0, 1, 1, 1], [], []>} : vector<64x16xf32>, vector<64x1xf32>, vector<16x1xf32> -> vector<16x1xf32>
    %c0_6 = arith.constant 0 : index
    %c0_7 = arith.constant 0 : index
    %8 = vector.load %arg3[%c0_6, %c0_7] : memref<16x1xf32, #tpu.memory_space<vmem>>, vector<16x1xf32>
    %9 = arith.addf %7, %8 : vector<16x1xf32>
    %cst_8 = arith.constant 0.000000e+00 : f32
    %10 = vector.broadcast %cst_8 : f32 to vector<16x1xf32>
    %11 = arith.maximumf %9, %10 : vector<16x1xf32>
    %c0_9 = arith.constant 0 : index
    %c0_10 = arith.constant 0 : index
    %12 = vector.load %arg4[%c0_9, %c0_10] : memref<16x64xf32, #tpu.memory_space<vmem>>, vector<16x64xf32>
    %cst_11 = arith.constant dense<0.000000e+00> : vector<64x1xf32>
    %13 = tpu.matmul %12, %11, %cst_11 {dimension_numbers = #tpu.dot_dimension_numbers<[0], [0], [1], [1], [0, 1, 1, 1], [], []>} : vector<16x64xf32>, vector<16x1xf32>, vector<64x1xf32> -> vector<64x1xf32>
    %c0_12 = arith.constant 0 : index
    %c0_13 = arith.constant 0 : index
    %14 = vector.load %arg5[%c0_12, %c0_13] : memref<64x1xf32, #tpu.memory_space<vmem>>, vector<64x1xf32>
    %15 = arith.addf %13, %14 : vector<64x1xf32>
    %cst_14 = arith.constant 3.000000e+00 : f32
    %16 = vector.broadcast %cst_14 : f32 to vector<64x1xf32>
    %17 = arith.addf %15, %16 : vector<64x1xf32>
    %cst_15 = arith.constant 0.000000e+00 : f32
    %cst_16 = arith.constant 6.000000e+00 : f32
    %18 = vector.broadcast %cst_15 : f32 to vector<64x1xf32>
    %19 = arith.maximumf %18, %17 : vector<64x1xf32>
    %20 = vector.broadcast %cst_16 : f32 to vector<64x1xf32>
    %21 = arith.minimumf %20, %19 : vector<64x1xf32>
    %cst_17 = arith.constant 0.166666672 : f32
    %22 = vector.broadcast %cst_17 : f32 to vector<64x1xf32>
    %23 = arith.mulf %21, %22 : vector<64x1xf32>
    %24 = vector.broadcast %23 : vector<64x1xf32> to vector<64x256xf32>
    %25 = arith.mulf %1, %24 : vector<64x256xf32>
    %c0_18 = arith.constant 0 : index
    %c0_19 = arith.constant 0 : index
    %c0_20 = arith.constant 0 : index
    %26 = vector.load %arg6[%c0_18, %c0_19, %c0_20] : memref<1x64x256xf32, #tpu.memory_space<vmem>>, vector<1x64x256xf32>
    %27 = vector.shape_cast %26 : vector<1x64x256xf32> to vector<64x256xf32>
    %28 = vector.shape_cast %25 : vector<64x256xf32> to vector<1x64x256xf32>
    tpu.vector_store %arg6[%c0_18, %c0_19, %c0_20], %28 {strides = array<i32>} : memref<1x64x256xf32, #tpu.memory_space<vmem>>, vector<1x64x256xf32>,
    return
  }
  func.func @transform_0(%arg0: i32) -> (i32, i32, i32) {
    %c0_i32 = arith.constant 0 : i32
    %c0_i32_0 = arith.constant 0 : i32
    %c0_i32_1 = arith.constant 0 : i32
    return %arg0, %c0_i32, %c0_i32_0 : i32, i32, i32
  }
  func.func @transform_1(%arg0: i32) -> (i32, i32) {
    %c0_i32 = arith.constant 0 : i32
    %c0_i32_0 = arith.constant 0 : i32
    %c0_i32_1 = arith.constant 0 : i32
    return %c0_i32, %c0_i32_0 : i32, i32
  }
  func.func @transform_2(%arg0: i32) -> (i32, i32) {
    %c0_i32 = arith.constant 0 : i32
    %c0_i32_0 = arith.constant 0 : i32
    %c0_i32_1 = arith.constant 0 : i32
    return %c0_i32, %c0_i32_0 : i32, i32
  }
  func.func @transform_3(%arg0: i32) -> (i32, i32) {
    %c0_i32 = arith.constant 0 : i32
    %c0_i32_0 = arith.constant 0 : i32
    %c0_i32_1 = arith.constant 0 : i32
    return %c0_i32, %c0_i32_0 : i32, i32
  }
  func.func @transform_4(%arg0: i32) -> (i32, i32) {
    %c0_i32 = arith.constant 0 : i32
    %c0_i32_0 = arith.constant 0 : i32
    %c0_i32_1 = arith.constant 0 : i32
    return %c0_i32, %c0_i32_0 : i32, i32
  }
  func.func @transform_5(%arg0: i32) -> (i32, i32, i32) {
    %c0_i32 = arith.constant 0 : i32
    %c0_i32_0 = arith.constant 0 : i32
    %c0_i32_1 = arith.constant 0 : i32
    return %arg0, %c0_i32, %c0_i32_0 : i32, i32, i32
  }
}

</mosaic_0001>

<bundles_post_ra>
// kernel: se_forward.1
= control target key start
LH: loop header
LB: loop body
LE: loop exit
PB: predicated region body
PF: predicated region fallthrough
CT: control target
= control target key end

     0   :  { %s859_s18 = smov 0   ;;  %s1033_s0 = inlined_call_operand.vmem [shape: f32[2,64,256], index: 0, kind: input, shape index: {}, may-alias: {0,5}]   ;;  %s1034_s1 = inlined_call_operand.vmem [shape: f32[64,16], index: 1, kind: input, shape index: {}]   ;;  %s1035_s2 = inlined_call_operand.vmem [shape: f32[16,1], index: 2, kind: input, shape index: {}]   ;;  %s1036_s3 = inlined_call_operand.vmem [shape: f32[16,64], index: 3, kind: input, shape index: {}]   ;;  %s1037_s4 = inlined_call_operand.vmem [shape: f32[64,1], index: 4, kind: input, shape index: {}]   ;;  %s1038_s5 = inlined_call_operand.vmem [shape: f32[2,64,256], index: 5, kind: output, shape index: {}, may-alias: {0,5}]  }
   0x1 LB: > { %s730_s19 = sadd.s32 4294967295, %s826_s18   ;;  %p734_p0 = scmp.ge.s32.totalorder %s826_s18, 1  ;;  %s826_s18 = sphi %s859_s18, %s15_s18  }
   0x2   : > { %p187_p1 = scmp.lt.s32.totalorder %s826_s18, 3 }
   0x4   : > { %p188_p2 = pnand %p734_p0, %p187_p1 }
   0x5   : > { %p215_p3 = scmp.lt.s32.totalorder (!%p188_p2), %s730_s19, 1 }
   0x6   : > { %191 = sbr.rel (%p188_p2) target bundleno = 752 (0x2f0), region = 40 }
   0xb   : > { %s1040_s19 = smov (!%p215_p3, %s730_s19), 1  ;;  %v273_v24 = vld [vmem:[%s1034_s1] sm:$0xff]  ;;  %v274_v25 = vld [vmem:[%s1034_s1 + $0x8] sm:$0xff]  ;;  %v275_v27 = vld [vmem:[%s1034_s1 + $0x10] sm:$0xff]  ;;  %vm315_vm0 = vcmask 523264   ;;  %vm441_vm1 = vcmask 130048  }
   0xc   : > { %s751_s20 = sshll.u32 %s1040_s19, 7  ;;  %v399_v26 = vld [vmem:[%s1036_s3] sm:$0xff]  ;;  %v400_v28 = vld [vmem:[%s1036_s3 + $0x8] sm:$0xff]  ;;  %v276_v29 = vld [vmem:[%s1034_s1 + $0x18] sm:$0xff] }
   0xd   : > { %s219_s23 = scalar_lea.vmem %s1033_s0, %s751_s20  ;;  %v277_v30 = vld [vmem:[%s1034_s1 + $0x20] sm:$0xff]  ;;  %v278_v31 = vld [vmem:[%s1034_s1 + $0x28] sm:$0xff]  ;;  %v279_v32 = vld [vmem:[%s1034_s1 + $0x30] sm:$0xff]  ;;  %s996_s22 = scalar_lea.vmem %s1038_s5, %s751_s20 }
   0xe   : > { %v875_v0 = vld [vmem:[%s219_s23 + $0x70] sm:$0xff]  ;;  %v877_v1 = vld [vmem:[%s219_s23 + $0x78] sm:$0xff]  ;;  %v879_v2 = vld [vmem:[%s219_s23 + $0x60] sm:$0xff] }
   0xf   : > { %v262_v3 = vadd.f32 %v877_v1, %v875_v0  ;;  %v883_v4 = vld [vmem:[%s219_s23 + $0x68] sm:$0xff]  ;;  %v885_v5 = vld [vmem:[%s219_s23 + $0x50] sm:$0xff]  ;;  %v887_v6 = vld [vmem:[%s219_s23 + $0x58] sm:$0xff] }
  0x10   : > { %v256_v7 = vadd.f32 %v887_v6, %v885_v5  ;;  %v891_v8 = vld [vmem:[%s219_s23 + $0x40] sm:$0xff]  ;;  %v893_v9 = vld [vmem:[%s219_s23 + $0x48] sm:$0xff]  ;;  %v259_v10 = vadd.f32 %v883_v4, %v879_v2  ;;  %v899_v12 = vld [vmem:[%s219_s23 + $0x30] sm:$0xff] }
  0x11   : > { %263 = vadd.xlane.f32.xlu0 %v262_v3  ;;  %v253_v11 = vadd.f32 %v893_v9, %v891_v8  ;;  %v901_v13 = vld [vmem:[%s219_s23 + $0x38] sm:$0xff]  ;;  %v903_v14 = vld [vmem:[%s219_s23 + $0x20] sm:$0xff]  ;;  %v905_v15 = vld [vmem:[%s219_s23 + $0x28] sm:$0xff] }
  0x12   : > { %257 = vadd.xlane.f32.xlu1 %v256_v7  ;;  %v250_v16 = vadd.f32 %v901_v13, %v899_v12  ;;  %v247_v17 = vadd.f32 %v905_v15, %v903_v14  ;;  %v911_v18 = vld [vmem:[%s219_s23 + $0x10] sm:$0xff]  ;;  %v913_v19 = vld [vmem:[%s219_s23 + $0x18] sm:$0xff]  ;;  %v915_v20 = vld [vmem:[%s219_s23] sm:$0xff] }
  0x13   : > { %v917_v21 = vld [vmem:[%s219_s23 + $0x8] sm:$0xff]  ;;  %v244_v22 = vadd.f32 %v913_v19, %v911_v18  ;;  %v280_v33 = vld [vmem:[%s1034_s1 + $0x38] sm:$0xff]  ;;  %v281_v58 = vld [vmem:[%s1035_s2] sm:$0xff] }
  0x14   : > { %v241_v23 = vadd.f32 %v917_v21, %v915_v20  ;;  %v282_v56 = vld [vmem:[%s1035_s2 + $0x8] sm:$0xff] }
  0x15   : > { %260 = vadd.xlane.f32.xlu0 %v259_v10 }
  0x16   : > { %254 = vadd.xlane.f32.xlu1 %v253_v11 }
  0x19   : > { %251 = vadd.xlane.f32.xlu0 %v250_v16  ;;  %v828_v16 = vmov 0  }
  0x1a   : > { %248 = vadd.xlane.f32.xlu1 %v247_v17  ;;  %v402_v17 = vld [vmem:[%s1037_s4 + $0x8] sm:$0xff] }
  0x1d   : > { %245 = vadd.xlane.f32.xlu0 %v244_v22 }
  0x1e   : > { %242 = vadd.xlane.f32.xlu1 %v241_v23  ;;  %v401_v23 = vld [vmem:[%s1037_s4] sm:$0xff] }
  0x4a   : > { %283 = vxpose.xlu0.b32.start [1/8] (short) (narrow) %v273_v24, 16 }
  0x4e   : > { %284 = vxpose.xlu0.b32.cont [2/8] (short) (narrow) %v274_v25, 16 }
  0x51   : > { %409 = vxpose.xlu1.b32.start [1/2] (short) (narrow) %v399_v26, 64  ;;  %v404_v26 = vld [vmem:[%s1037_s4 + $0x18] sm:$0xff] }
  0x52   : > { %285 = vxpose.xlu0.b32.cont [3/8] (short) (narrow) %v275_v27, 16 }
  0x55   : > { %410 = vxpose.xlu1.b32.end [2/2] (short) (narrow) %v400_v28, 64 }
  0x56   : > { %286 = vxpose.xlu0.b32.cont [4/8] (short) (narrow) %v276_v29, 16 }
  0x5a   : > { %287 = vxpose.xlu0.b32.cont [5/8] (short) (narrow) %v277_v30, 16  ;;  %v403_v30 = vld [vmem:[%s1037_s4 + $0x10] sm:$0xff] }
  0x5e   : > { %288 = vxpose.xlu0.b32.cont [6/8] (short) (narrow) %v278_v31, 16 }
  0x62   : > { %289 = vxpose.xlu0.b32.cont [7/8] (short) (narrow) %v279_v32, 16 }
  0x66   : > { %290 = vxpose.xlu0.b32.end [8/8] (short) (narrow) %v280_v33, 16 }
  0x73   : > { %819 = vset.pattern.permute.xlu1 %v828_v16 }
  0x8f   : > { %818 = vset.pattern.permute.xlu0 %v828_v16 }
  0x9a   : > { %v264_v34 = vpop.xlane.xlu0 %263 }
  0x9b   : > { %v272_v35 = vmul.f32 0.00390625, %v264_v34  ;;  %v258_v36 = vpop.xlane.xlu1 %257 }
  0x9c   : > { %v270_v39 = vmul.f32 0.00390625, %v258_v36 }
  0x9d   : > { %773 = vmatprep.subr.mxu0 %v272_v35 }
  0x9e   : > { %774 = vmatpush3.msra.mxu0 %v272_v35  ;;  %v261_v37 = vpop.xlane.xlu0 %260 }
  0x9f   : > { %v271_v38 = vmul.f32 0.00390625, %v261_v37  ;;  %v255_v40 = vpop.xlane.xlu1 %254 }
  0xa0   : > { %v269_v41 = vmul.f32 0.00390625, %v255_v40 }
  0xa1   : > { %775 = vmatprep.subr.mxu0 %v271_v38 }
  0xa2   : > { %776 = vmatpush3.msra.mxu0 %v271_v38  ;;  %v252_v42 = vpop.xlane.xlu0 %251 }
  0xa3   : > { %777 = vmatprep.subr.mxu0 %v270_v39  ;;  %v249_v43 = vpop.xlane.xlu1 %248  ;;  %v268_v44 = vmul.f32 0.00390625, %v252_v42 }
  0xa4   : > { %778 = vmatpush3.msra.mxu0 %v270_v39  ;;  %v267_v45 = vmul.f32 0.00390625, %v249_v43  ;;  %v406_v39 = vld [vmem:[%s1037_s4 + $0x28] sm:$0xff] }
  0xa5   : > { %779 = vmatprep.subr.mxu0 %v269_v41 }
  0xa6   : > { %780 = vmatpush3.msra.mxu0 %v269_v41  ;;  %v246_v46 = vpop.xlane.xlu0 %245  ;;  %v405_v41 = vld [vmem:[%s1037_s4 + $0x20] sm:$0xff] }
  0xa7   : > { %781 = vmatprep.subr.mxu0 %v268_v44  ;;  %v243_v47 = vpop.xlane.xlu1 %242  ;;  %v266_v48 = vmul.f32 0.00390625, %v246_v46 }
  0xa8   : > { %782 = vmatpush3.msra.mxu0 %v268_v44  ;;  %v265_v49 = vmul.f32 0.00390625, %v243_v47 }
  0xa9   : > { %783 = vmatprep.subr.mxu0 %v267_v45 }
  0xaa   : > { %784 = vmatpush3.msra.mxu0 %v267_v45 }
  0xab   : > { %785 = vmatprep.subr.mxu0 %v266_v48 }
  0xac   : > { %786 = vmatpush3.msra.mxu0 %v266_v48  ;;  %v408_v48 = vld [vmem:[%s1037_s4 + $0x38] sm:$0xff] }
  0xad   : > { %787 = vmatprep.subr.mxu0 %v265_v49 }
  0xae   : > { %788 = vmatpush3.msra.mxu0 %v265_v49 }
  0xc6   : > { %v299_v50 = vpop.trf.xlu0 }
  0xc7   : > { %789 = vmatprep.mubr.msk.f32.mxu0 %vm315_vm0, %v299_v50 }
  0xca   : > { %v300_v51 = vpop.trf.xlu0 }
  0xcb   : > { %790 = vmatmul.mubr.msk.f32.vlgmr.msra.gmra.mxu0 %vm315_vm0, %v300_v51 }
  0xcd   : > { %v425_v52 = vpop.trf.xlu1 }
  0xce   : > { %796 = vmatprep.mubr.msk.f32.mxu1 %vm441_vm1, %v425_v52 }
  0xd1   : > { %v426_v53 = vpop.trf.xlu1 }
  0xd5   : > { %v427_v54 = vpop.trf.xlu1 }
  0xd9   : > { %v428_v55 = vpop.trf.xlu1 }
  0xdd   : > { %v429_v59 = vpop.trf.xlu1 }
  0xe1   : > { %v430_v7 = vpop.trf.xlu1 }
  0xe5   : > { %v431_v10 = vpop.trf.xlu1 }
  0xe9   : > { %v432_v11 = vpop.trf.xlu1 }
 0x18b   : > { %v791_v57 = vpop.f32.mrf.mxu0 }
 0x18c   : > { %v394_v60 = vadd.f32 %v791_v57, %v282_v56 }
 0x18d   : > { %v388_v61 = vpop.f32.mrf.mxu0 }
 0x18e   : > { %v398_v62 = vmax.f32 %v394_v60, 0.0  ;;  %v389_v63 = vadd.f32 %v388_v61, %v281_v58 }
 0x190   : > { %v397_v3 = vmax.f32 %v389_v63, 0.0  ;;  %792 = vmatprep.subr.mxu1 %v398_v62 }
 0x191   : > { %793 = vmatpush3.msra.mxu1 %v398_v62 }
 0x192   : > { %794 = vmatprep.subr.mxu1 %v397_v3 }
 0x193   : > { %795 = vmatpush3.msra.mxu1 %v397_v3 }
 0x194   : > { %797 = vmatmul.mubr.msk.f32.vlgmr.msra.gmra.mxu1 %vm441_vm1, %v426_v53 }
 0x195   : > { %799 = vmatprep.mubr.msk.f32.mxu1 %vm441_vm1, %v427_v54 }
 0x198   : > { %800 = vmatmul.mubr.msk.f32.gmra.mxu1 %vm441_vm1, %v428_v55  ;;  %v407_v55 = vld [vmem:[%s1037_s4 + $0x30] sm:$0xff] }
 0x199   : > { %802 = vmatprep.mubr.msk.f32.mxu1 %vm441_vm1, %v429_v59 }
 0x19c   : > { %803 = vmatmul.mubr.msk.f32.gmra.mxu1 %vm441_vm1, %v430_v7 }
 0x19d   : > { %805 = vmatprep.mubr.msk.f32.mxu1 %vm441_vm1, %v431_v10 }
 0x1a0   : > { %806 = vmatmul.mubr.msk.f32.gmra.mxu1 %vm441_vm1, %v432_v11 }
 0x254   : > { %v798_v22 = vpop.f32.mrf.mxu1 }
 0x255   : > { %v538_v24 = vadd.f32 %v798_v22, %v402_v17 }
 0x256   : > { %v532_v25 = vpop.f32.mrf.mxu1 }
 0x257   : > { %v572_v27 = vadd.f32 3.0, %v538_v24  ;;  %v533_v28 = vadd.f32 %v532_v25, %v401_v23 }
 0x258   : > { %v801_v29 = vpop.f32.mrf.mxu1 }
 0x259   : > { %v580_v31 = vmax.f32 %v572_v27, 0.0  ;;  %v571_v32 = vadd.f32 3.0, %v533_v28  ;;  %v548_v33 = vadd.f32 %v801_v29, %v404_v26 }
 0x25a   : > { %v542_v34 = vpop.f32.mrf.mxu1 }
 0x25b   : > { %v588_v35 = vmin.f32 %v580_v31, 6.0  ;;  %v579_v36 = vmax.f32 %v571_v32, 0.0  ;;  %v574_v37 = vadd.f32 3.0, %v548_v33  ;;  %v543_v38 = vadd.f32 %v542_v34, %v403_v30 }
 0x25c   : > { %v804_v40 = vpop.f32.mrf.mxu1 }
 0x25d   : > { %v596_v42 = vmul.f32 0.16666667, %v588_v35  ;;  %v587_v43 = vmin.f32 %v579_v36, 6.0  ;;  %v582_v44 = vmax.f32 %v574_v37, 0.0  ;;  %v573_v45 = vadd.f32 3.0, %v543_v38 }
 0x25e   : > { %v558_v46 = vadd.f32 %v804_v40, %v406_v39  ;;  %v552_v47 = vpop.f32.mrf.mxu1 }
 0x25f   : > { %v595_v49 = vmul.f32 0.16666667, %v587_v43  ;;  %v590_v50 = vmin.f32 %v582_v44, 6.0  ;;  %v581_v51 = vmax.f32 %v573_v45, 0.0  ;;  %v553_v52 = vadd.f32 %v552_v47, %v405_v41  ;;  %610 = vperm.xlu0 %818, %v596_v42  }
 0x260   : > { %v576_v53 = vadd.f32 3.0, %v558_v46  ;;  %v807_v54 = vpop.f32.mrf.mxu1 }
 0x261   : > { %v575_v56 = vadd.f32 3.0, %v553_v52  ;;  %v568_v57 = vadd.f32 %v807_v54, %v408_v48  ;;  %605 = vperm.xlu1 %819, %v595_v49   ;;  %v598_v58 = vmul.f32 0.16666667, %v590_v50  ;;  %v589_v59 = vmin.f32 %v581_v51, 6.0 }
 0x262   : > { %v562_v60 = vpop.f32.mrf.mxu1  ;;  %v584_v61 = vmax.f32 %v576_v53, 0.0 }
 0x263   : > { %v583_v62 = vmax.f32 %v575_v56, 0.0  ;;  %v578_v63 = vadd.f32 3.0, %v568_v57  ;;  %v563_v3 = vadd.f32 %v562_v60, %v407_v55  ;;  %v597_v11 = vmul.f32 0.16666667, %v589_v59 }
 0x264   : > { %v592_v16 = vmin.f32 %v584_v61, 6.0 }
 0x265   : > { %v591_v7 = vmin.f32 %v583_v62, 6.0  ;;  %v577_v10 = vadd.f32 3.0, %v563_v3  ;;  %620 = vperm.xlu1 %819, %v598_v58   ;;  %v586_v22 = vmax.f32 %v578_v63, 0.0 }
 0x266   : > { %v600_v25 = vmul.f32 0.16666667, %v592_v16 }
 0x267   : > { %v599_v17 = vmul.f32 0.16666667, %v591_v7  ;;  %v585_v23 = vmax.f32 %v577_v10, 0.0  ;;  %v594_v26 = vmin.f32 %v586_v22, 6.0 }
 0x269   : > { %v593_v24 = vmin.f32 %v585_v23, 6.0  ;;  %615 = vperm.xlu1 %819, %v597_v11   ;;  %625 = vperm.xlu0 %818, %v599_v17   ;;  %v602_v28 = vmul.f32 0.16666667, %v594_v26 }
 0x26b   : > { %v601_v27 = vmul.f32 0.16666667, %v593_v24 }
 0x26d   : > { %630 = vperm.xlu1 %819, %v600_v25   ;;  %635 = vperm.xlu0 %818, %v601_v27  }
 0x271   : > { %640 = vperm.xlu1 %819, %v602_v28  }
 0x2da   : > { %v611_v29 = vpop.permute.xlu0 %610 }
 0x2db   : > { %v645_v30 = vmul.f32 %v611_v29, %v911_v18  ;;  %v646_v31 = vmul.f32 %v611_v29, %v913_v19 }
 0x2dc   : > { %v606_v32 = vpop.permute.xlu1 %605 }
 0x2dd   : > { %661 = vst [vmem:[%s996_s22 + $0x10] sm:$0xff] %v645_v30  ;;  %662 = vst [vmem:[%s996_s22 + $0x18] sm:$0xff] %v646_v31  ;;  %v643_v33 = vmul.f32 %v606_v32, %v915_v20  ;;  %v644_v34 = vmul.f32 %v606_v32, %v917_v21 }
 0x2df   : > { %659 = vst [vmem:[%s996_s22] sm:$0xff] %v643_v33  ;;  %660 = vst [vmem:[%s996_s22 + $0x8] sm:$0xff] %v644_v34 }
 0x2e0   : > { %v621_v35 = vpop.permute.xlu1 %620 }
 0x2e1   : > { %v649_v36 = vmul.f32 %v621_v35, %v899_v12  ;;  %v650_v18 = vmul.f32 %v621_v35, %v901_v13 }
 0x2e3   : > { %665 = vst [vmem:[%s996_s22 + $0x30] sm:$0xff] %v649_v36  ;;  %666 = vst [vmem:[%s996_s22 + $0x38] sm:$0xff] %v650_v18 }
 0x2e4   : > { %v626_v19 = vpop.permute.xlu0 %625  ;;  %v616_v37 = vpop.permute.xlu1 %615 }
 0x2e5   : > { %v651_v20 = vmul.f32 %v626_v19, %v891_v8  ;;  %v652_v21 = vmul.f32 %v626_v19, %v893_v9  ;;  %v647_v38 = vmul.f32 %v616_v37, %v903_v14  ;;  %v648_v39 = vmul.f32 %v616_v37, %v905_v15 }
 0x2e7   : > { %667 = vst [vmem:[%s996_s22 + $0x40] sm:$0xff] %v651_v20  ;;  %668 = vst [vmem:[%s996_s22 + $0x48] sm:$0xff] %v652_v21 }
 0x2e8   : > { %663 = vst [vmem:[%s996_s22 + $0x20] sm:$0xff] %v647_v38  ;;  %664 = vst [vmem:[%s996_s22 + $0x28] sm:$0xff] %v648_v39  ;;  %v636_v12 = vpop.permute.xlu0 %635  ;;  %v631_v13 = vpop.permute.xlu1 %630 }
 0x2e9   : > { %v655_v40 = vmul.f32 %v636_v12, %v879_v2  ;;  %v656_v8 = vmul.f32 %v636_v12, %v883_v4  ;;  %v653_v41 = vmul.f32 %v631_v13, %v885_v5  ;;  %v654_v9 = vmul.f32 %v631_v13, %v887_v6 }
 0x2eb   : > { %671 = vst [vmem:[%s996_s22 + $0x60] sm:$0xff] %v655_v40  ;;  %672 = vst [vmem:[%s996_s22 + $0x68] sm:$0xff] %v656_v8 }
 0x2ec   : > { %669 = vst [vmem:[%s996_s22 + $0x50] sm:$0xff] %v653_v41  ;;  %670 = vst [vmem:[%s996_s22 + $0x58] sm:$0xff] %v654_v9  ;;  %v641_v14 = vpop.permute.xlu1 %640 }
 0x2ed   : > { %v657_v15 = vmul.f32 %v641_v14, %v875_v0  ;;  %v658_v42 = vmul.f32 %v641_v14, %v877_v1 }
 0x2ef   : > { %673 = vst [vmem:[%s996_s22 + $0x70] sm:$0xff] %v657_v15  ;;  %674 = vst [vmem:[%s996_s22 + $0x78] sm:$0xff] %v658_v42 }
 0x2f0 PF: > { %s15_s18 = sadd.s32 1, %s826_s18  }
 0x2f1   : > { %p12_p4 = scmp.ge.s32.totalorder %s15_s18, 4  }
 0x2f3   :  { %14 = sbr.rel (!%p12_p4) target bundleno = 1 (0x1), region = 70 }

</bundles_post_ra>
